<compile_context>
chip_gen: v5e
topology: v5e:2x2
jax: 0.10.0
libtpu: 0.0.40
codegen_flags: <defaults>
</compile_context>

<pallas_src>
import jax
import jax.numpy as jnp
from jax.experimental import pallas as pl
from jax.experimental.pallas import tpu as pltpu


# ----------------------------- Pallas kernel --------------------------------

def make_hybrid_kernel(n_players, tile_b, matmul_dtype):
    L = n_players
    TBL = tile_b * L
    f32 = jnp.float32

    def kernel(xp_ref, team_ref, edge_ref,
               w1_ref, w2_ref, fcpw_ref, fctw_ref, wc1p_ref, wc1t_ref,
               slab_ref, out_ref):

        def mm(a, w_ref):
            # MXU matmul with (optionally) bf16 operands, f32 accumulation.
            return jnp.dot(a.astype(matmul_dtype), w_ref[...],
                           preferred_element_type=f32)

        keep_l = edge_ref[:, 0:1]          # (TBL,1): 0 at first player of a sample
        keep_r = edge_ref[:, 1:2]          # (TBL,1): 0 at last player of a sample

        def tap3(h):
            # Conv1d(k=3, padding=1) neighbour taps via sublane rotation; the
            # edge masks reproduce the zero padding exactly (no cross-sample
            # leakage).  Fused into one wide-K operand along the lane axis.
            h_l = pltpu.roll(h, 1, axis=0) * keep_l         # h[r-1]
            h_r = pltpu.roll(h, TBL - 1, axis=0) * keep_r   # h[r+1]
            return jnp.concatenate([h_l, h, h_r], axis=-1)

        x = xp_ref[...].astype(f32)                                    # (TBL, F)

        # player_net: Conv1d(F->32) + folded BN + ReLU   (one K=3F matmul)
        h1 = jnp.maximum(mm(tap3(x), w1_ref) + slab_ref[0:1, 0:32], 0.0)
        # player_net: Conv1d(32->64) + folded BN + ReLU  (one K=96 matmul)
        h2 = jnp.maximum(mm(tap3(h1), w2_ref) + slab_ref[1:2, 0:64], 0.0)

        # AdaptiveAvgPool1d(1): per-sample mean over L positions, via a tiny
        # in-kernel block-diagonal averaging matrix (built from iota, no HBM).
        bi = jax.lax.broadcasted_iota(jnp.int32, (tile_b, TBL), 0)
        cj = jax.lax.broadcasted_iota(jnp.int32, (tile_b, TBL), 1)
        pool = jnp.where((cj >= bi * L) & (cj < bi * L + L),
                         jnp.float32(1.0 / L), jnp.float32(0.0))
        pooled = jnp.dot(pool, h2, preferred_element_type=f32)        # (TB, 64)

        # Flatten + Linear(64,128)  (Dropout = identity at inference)
        player_out = mm(pooled, fcpw_ref) + slab_ref[2:3, :]           # (TB, 128)

        # team_net: Linear(TF,128) + folded BN + ReLU
        team_h = jnp.maximum(mm(team_ref[...], fctw_ref) + slab_ref[3:4, :], 0.0)

        # combined: cat -> Linear(256,128) + folded BN + ReLU -> Linear(128,1)
        comb = jnp.maximum(mm(player_out, wc1p_ref) + mm(team_h, wc1t_ref)
                           + slab_ref[4:5, :], 0.0)                    # (TB, 128)
        out = (jnp.sum(comb * slab_ref[5:6, :], axis=-1, keepdims=True)
               + slab_ref[6:7, 0:1])                                   # (TB, 1)
        out_ref[...] = out

    return kernel


# ------------------------------ wrapper --------------------------------------

def hybrid_nba_forward(player_stats, team_features, params, *,
                       matmul_dtype=jnp.bfloat16, tile_b=8):
    """player_stats: (B, n_players, F), team_features: (B, TF). Returns (B,)."""
    B, L, F = player_stats.shape
    TF = team_features.shape[-1]
    TBL = tile_b * L

    # Pad the batch to a multiple of the batch tile (zeros; sliced off below).
    B_pad = -(-B // tile_b) * tile_b
    xp = player_stats.astype(jnp.float32)
    tm = team_features.astype(jnp.float32)
    if B_pad != B:
        xp = jnp.concatenate([xp, jnp.zeros((B_pad - B, L, F), jnp.float32)], 0)
        tm = jnp.concatenate([tm, jnp.zeros((B_pad - B, TF), jnp.float32)], 0)
    # Player branch stays channels-last, flattened to (B_pad*L, F) rows.
    xp2 = xp.reshape(B_pad * L, F).astype(matmul_dtype)
    # Team features are tiny; kept f32 in HBM and cast inside the kernel.

    # Fold eval-mode BatchNorm into weights/biases; fuse conv taps into one K.
    w1 = (params['c1w'].reshape(3 * F, 32) * params['bn1s']).astype(matmul_dtype)
    b1 = params['c1b'] * params['bn1s'] + params['bn1t']
    w2 = (params['c2w'].reshape(3 * 32, 64) * params['bn2s']).astype(matmul_dtype)
    b2 = params['c2b'] * params['bn2s'] + params['bn2t']
    fcp_w = params['fcp_w'].astype(matmul_dtype)
    fct_w = (params['fct_w'] * params['bnt_s']).astype(matmul_dtype)
    fct_b = params['fct_b'] * params['bnt_s'] + params['bnt_t']
    wc1p = (params['wc1p'] * params['bnc_s']).astype(matmul_dtype)
    wc1t = (params['wc1t'] * params['bnc_s']).astype(matmul_dtype)
    bc1 = params['bc1'] * params['bnc_s'] + params['bnc_t']

    # Pack all small per-channel vectors into one (8, 128) f32 slab (one DMA).
    slab = jnp.zeros((8, 128), jnp.float32)
    slab = slab.at[0, :32].set(b1[0])
    slab = slab.at[1, :64].set(b2[0])
    slab = slab.at[2, :].set(params['fcp_b'][0])
    slab = slab.at[3, :].set(fct_b[0])
    slab = slab.at[4, :].set(bc1[0])
    slab = slab.at[5, :].set(params['wc2_row'][0])
    slab = slab.at[6, 0].set(params['bc2'][0, 0])

    # Per-row masks zeroing the k=3 taps at sample boundaries (per-tile layout,
    # identical across grid steps -> constant index_map, resident in VMEM).
    pos = jnp.arange(TBL, dtype=jnp.int32) % L
    edges = jnp.stack([(pos != 0), (pos != L - 1)], axis=1).astype(jnp.float32)

    kernel = make_hybrid_kernel(L, tile_b, matmul_dtype)
    const = lambda i: (0, 0)
    out = pl.pallas_call(
        kernel,
        out_shape=jax.ShapeDtypeStruct((B_pad, 1), jnp.float32),
        grid=(B_pad // tile_b,),
        in_specs=[
            pl.BlockSpec((TBL, F), lambda i: (i, 0)),       # player rows (tiled)
            pl.BlockSpec((tile_b, TF), lambda i: (i, 0)),   # team rows (tiled)
            pl.BlockSpec((TBL, 2), const),                  # edge masks (resident)
            pl.BlockSpec(w1.shape, const),                  # weights (resident)
            pl.BlockSpec(w2.shape, const),
            pl.BlockSpec(fcp_w.shape, const),
            pl.BlockSpec(fct_w.shape, const),
            pl.BlockSpec(wc1p.shape, const),
            pl.BlockSpec(wc1t.shape, const),
            pl.BlockSpec((8, 128), const),                  # bias/vector slab
        ],
        out_specs=pl.BlockSpec((tile_b, 1), lambda i: (i, 0)),
        compiler_params=pltpu.CompilerParams(
            dimension_semantics=("parallel",)),             # v7x: shard batch over 2 TCs
    )(xp2, tm, edges, w1, w2, fcp_w, fct_w, wc1p, wc1t, slab)
    return out[:B, 0]                                       # .squeeze() -> (B,)


# --------------------------- parameter init ----------------------------------

def init_params(key, n_player_features=12, n_team_features=16, eps=1e-5):
    ks = list(jax.random.split(key, 32))

    def nxt():
        return ks.pop()

    def linear(cin, cout):
        bound = 1.0 / float(cin) ** 0.5
        w = jax.random.uniform(nxt(), (cin, cout), jnp.float32, -bound, bound)
        b = jax.random.uniform(nxt(), (1, cout), jnp.float32, -bound, bound)
        return w, b

    def conv(cin, cout, k=3):
        bound = 1.0 / float(cin * k) ** 0.5
        w = jax.random.uniform(nxt(), (k, cin, cout), jnp.float32, -bound, bound)
        b = jax.random.uniform(nxt(), (1, cout), jnp.float32, -bound, bound)
        return w, b

    def bn(c):
        gamma = jax.random.uniform(nxt(), (c,), jnp.float32, 0.5, 1.5)
        beta = 0.1 * jax.random.normal(nxt(), (c,), jnp.float32)
        mean = 0.1 * jax.random.normal(nxt(), (c,), jnp.float32)
        var = jax.random.uniform(nxt(), (c,), jnp.float32, 0.5, 1.5)
        scale = gamma / jnp.sqrt(var + eps)           # eval-mode BN folded
        shift = beta - mean * scale
        return scale.reshape(1, c), shift.reshape(1, c)

    p = {}
    p['c1w'], p['c1b'] = conv(n_player_features, 32)
    p['bn1s'], p['bn1t'] = bn(32)
    p['c2w'], p['c2b'] = conv(32, 64)
    p['bn2s'], p['bn2t'] = bn(64)
    p['fcp_w'], p['fcp_b'] = linear(64, 128)
    p['fct_w'], p['fct_b'] = linear(n_team_features, 128)
    p['bnt_s'], p['bnt_t'] = bn(128)
    wc1, p['bc1'] = linear(256, 128)
    p['wc1p'], p['wc1t'] = wc1[:128], wc1[128:]        # cat([player, team]) split
    p['bnc_s'], p['bnc_t'] = bn(128)
    wc2, p['bc2'] = linear(128, 1)
    p['wc2_row'] = wc2.T                               # (1, 128)
    return p


# --------------------------- pure-JAX reference ------------------------------

def reference_forward(player_stats, team, p):
    def conv_bn_relu(x, w, b, s, t):
        Lx = x.shape[1]
        xpad = jnp.pad(x, ((0, 0), (1, 1), (0, 0)))
        y = b
        for k in range(3):
            y = y + jnp.einsum('blc,cd->bld', xpad[:, k:k + Lx, :], w[k])
        return jax.nn.relu(y * s + t)

    h1 = conv_bn_relu(player_stats, p['c1w'], p['c1b'], p['bn1s'], p['bn1t'])
    h2 = conv_bn_relu(h1, p['c2w'], p['c2b'], p['bn2s'], p['bn2t'])
    pooled = jnp.mean(h2, axis=1)
    player_out = pooled @ p['fcp_w'] + p['fcp_b']
    team_h = jax.nn.relu((team @ p['fct_w'] + p['fct_b']) * p['bnt_s'] + p['bnt_t'])
    comb = jax.nn.relu((player_out @ p['wc1p'] + team_h @ p['wc1t'] + p['bc1'])
                       * p['bnc_s'] + p['bnc_t'])
    out = jnp.sum(comb * p['wc2_row'], axis=-1, keepdims=True) + p['bc2']
    return jnp.squeeze(out, axis=-1)


# ------------------------------------ main ------------------------------------

if __name__ == "__main__":
    # TODO(synk): train-mode BatchNorm (batch statistics) and stochastic Dropout
    # are not implemented; this kernel reproduces the inference forward pass.
    B, N_PLAYERS, PF, TF = 16, 8, 12, 16
    key = jax.random.PRNGKey(0)
    kx, kt, kp = jax.random.split(key, 3)
    player_stats = jax.random.normal(kx, (B, N_PLAYERS, PF), jnp.float32)
    team_features = jax.random.normal(kt, (B, TF), jnp.float32)
    params = init_params(kp, PF, TF)

    ref = reference_forward(player_stats, team_features, params)

    # Exact-semantics check: f32 matmul operands (tight tolerance).
    out_f32 = jax.block_until_ready(hybrid_nba_forward(
        player_stats, team_features, params, matmul_dtype=jnp.float32))
    assert out_f32.shape == (B,), out_f32.shape
    assert jnp.allclose(out_f32, ref, atol=1e-3, rtol=1e-3), (out_f32, ref)

    # Production path: bf16 matmul operands, f32 accumulation (v5e/v6e/v7x MXU).
    out_bf16 = jax.block_until_ready(hybrid_nba_forward(
        player_stats, team_features, params, matmul_dtype=jnp.bfloat16))
    assert out_bf16.shape == (B,), out_bf16.shape
    assert jnp.allclose(out_bf16, ref, atol=8e-2, rtol=5e-2), (out_bf16, ref)

    print("KERNEL_OK")
</pallas_src>

<mosaic_0001>
module attributes {stable_mosaic.version = 11 : i64} {
  func.func @kernel(%arg0: i32, %arg1: memref<64x12xf32, #tpu.memory_space<vmem>>, %arg2: memref<8x16xf32, #tpu.memory_space<vmem>>, %arg3: memref<64x2xf32, #tpu.memory_space<vmem>>, %arg4: memref<36x32xf32, #tpu.memory_space<vmem>>, %arg5: memref<96x64xf32, #tpu.memory_space<vmem>>, %arg6: memref<64x128xf32, #tpu.memory_space<vmem>>, %arg7: memref<16x128xf32, #tpu.memory_space<vmem>>, %arg8: memref<128x128xf32, #tpu.memory_space<vmem>>, %arg9: memref<128x128xf32, #tpu.memory_space<vmem>>, %arg10: memref<8x128xf32, #tpu.memory_space<vmem>>, %arg11: memref<8x1xf32, #tpu.memory_space<vmem>>) attributes {dimension_semantics = [#tpu.dimension_semantics<parallel>], iteration_bounds = array<i64: 2>, scalar_prefetch = 0 : i64, scratch_operands = 0 : i64, tpu.core_type = #tpu.core_type<tc>, window_params = [{transform_indices = @transform_0, window_bounds = array<i64: 64, 12>}, {transform_indices = @transform_1, window_bounds = array<i64: 8, 16>}, {pipeline_mode = #tpu.pipeline_mode<synchronous>, transform_indices = @transform_2, window_bounds = array<i64: 64, 2>}, {pipeline_mode = #tpu.pipeline_mode<synchronous>, transform_indices = @transform_3, window_bounds = array<i64: 36, 32>}, {pipeline_mode = #tpu.pipeline_mode<synchronous>, transform_indices = @transform_4, window_bounds = array<i64: 96, 64>}, {pipeline_mode = #tpu.pipeline_mode<synchronous>, transform_indices = @transform_5, window_bounds = array<i64: 64, 128>}, {pipeline_mode = #tpu.pipeline_mode<synchronous>, transform_indices = @transform_6, window_bounds = array<i64: 16, 128>}, {pipeline_mode = #tpu.pipeline_mode<synchronous>, transform_indices = @transform_7, window_bounds = array<i64: 128, 128>}, {pipeline_mode = #tpu.pipeline_mode<synchronous>, transform_indices = @transform_8, window_bounds = array<i64: 128, 128>}, {pipeline_mode = #tpu.pipeline_mode<synchronous>, transform_indices = @transform_9, window_bounds = array<i64: 8, 128>}, {transform_indices = @transform_10, window_bounds = array<i64: 8, 1>}]} {
    %c0 = arith.constant 0 : index
    %c0_0 = arith.constant 0 : index
    %0 = vector.load %arg3[%c0, %c0_0] : memref<64x2xf32, #tpu.memory_space<vmem>>, vector<64x1xf32>
    %c0_1 = arith.constant 0 : index
    %c1 = arith.constant 1 : index
    %1 = vector.load %arg3[%c0_1, %c1] : memref<64x2xf32, #tpu.memory_space<vmem>>, vector<64x1xf32>
    %c0_2 = arith.constant 0 : index
    %c0_3 = arith.constant 0 : index
    %2 = vector.load %arg1[%c0_2, %c0_3] : memref<64x12xf32, #tpu.memory_space<vmem>>, vector<64x12xf32>
    %c1_i32 = arith.constant 1 : i32
    %3 = tpu.dynamic_rotate %2 by %c1_i32 dim 0 : vector<64x12xf32>, i32 -> vector<64x12xf32>
    %4 = vector.broadcast %0 : vector<64x1xf32> to vector<64x12xf32>
    %5 = arith.mulf %3, %4 : vector<64x12xf32>
    %c63_i32 = arith.constant 63 : i32
    %6 = tpu.dynamic_rotate %2 by %c63_i32 dim 0 : vector<64x12xf32>, i32 -> vector<64x12xf32>
    %7 = vector.broadcast %1 : vector<64x1xf32> to vector<64x12xf32>
    %8 = arith.mulf %6, %7 : vector<64x12xf32>
    %9 = tpu.concatenate %5, %2, %8 in 1 : vector<64x12xf32>, vector<64x12xf32>, vector<64x12xf32> -> vector<64x36xf32>
    %c0_4 = arith.constant 0 : index
    %c0_5 = arith.constant 0 : index
    %10 = vector.load %arg4[%c0_4, %c0_5] : memref<36x32xf32, #tpu.memory_space<vmem>>, vector<36x32xf32>
    %cst = arith.constant dense<0.000000e+00> : vector<64x32xf32>
    %11 = tpu.matmul %9, %10, %cst {dimension_numbers = #tpu.dot_dimension_numbers<[1], [0], [0], [1], [0, 0, 1, 1], [], []>} : vector<64x36xf32>, vector<36x32xf32>, vector<64x32xf32> -> vector<64x32xf32>
    %c0_6 = arith.constant 0 : index
    %c0_7 = arith.constant 0 : index
    %12 = vector.load %arg10[%c0_6, %c0_7] : memref<8x128xf32, #tpu.memory_space<vmem>>, vector<1x32xf32>
    %13 = vector.broadcast %12 : vector<1x32xf32> to vector<64x32xf32>
    %14 = arith.addf %11, %13 : vector<64x32xf32>
    %cst_8 = arith.constant 0.000000e+00 : f32
    %15 = vector.broadcast %cst_8 : f32 to vector<64x32xf32>
    %16 = arith.maximumf %14, %15 : vector<64x32xf32>
    %c1_i32_9 = arith.constant 1 : i32
    %17 = tpu.dynamic_rotate %16 by %c1_i32_9 dim 0 : vector<64x32xf32>, i32 -> vector<64x32xf32>
    %18 = vector.broadcast %0 : vector<64x1xf32> to vector<64x32xf32>
    %19 = arith.mulf %17, %18 : vector<64x32xf32>
    %c63_i32_10 = arith.constant 63 : i32
    %20 = tpu.dynamic_rotate %16 by %c63_i32_10 dim 0 : vector<64x32xf32>, i32 -> vector<64x32xf32>
    %21 = vector.broadcast %1 : vector<64x1xf32> to vector<64x32xf32>
    %22 = arith.mulf %20, %21 : vector<64x32xf32>
    %23 = tpu.concatenate %19, %16, %22 in 1 : vector<64x32xf32>, vector<64x32xf32>, vector<64x32xf32> -> vector<64x96xf32>
    %c0_11 = arith.constant 0 : index
    %c0_12 = arith.constant 0 : index
    %24 = vector.load %arg5[%c0_11, %c0_12] : memref<96x64xf32, #tpu.memory_space<vmem>>, vector<96x64xf32>
    %cst_13 = arith.constant dense<0.000000e+00> : vector<64x64xf32>
    %25 = tpu.matmul %23, %24, %cst_13 {dimension_numbers = #tpu.dot_dimension_numbers<[1], [0], [0], [1], [0, 0, 1, 1], [], []>} : vector<64x96xf32>, vector<96x64xf32>, vector<64x64xf32> -> vector<64x64xf32>
    %c1_14 = arith.constant 1 : index
    %c0_15 = arith.constant 0 : index
    %26 = vector.load %arg10[%c1_14, %c0_15] : memref<8x128xf32, #tpu.memory_space<vmem>>, vector<1x64xf32>
    %27 = vector.broadcast %26 : vector<1x64xf32> to vector<64x64xf32>
    %28 = arith.addf %25, %27 : vector<64x64xf32>
    %cst_16 = arith.constant 0.000000e+00 : f32
    %29 = vector.broadcast %cst_16 : f32 to vector<64x64xf32>
    %30 = arith.maximumf %28, %29 : vector<64x64xf32>
    %31 = tpu.iota {dimensions = array<i32: 0>} : vector<8x64xi32>
    %32 = tpu.iota {dimensions = array<i32: 1>} : vector<8x64xi32>
    %c8_i32 = arith.constant 8 : i32
    %33 = vector.broadcast %c8_i32 : i32 to vector<8x64xi32>
    %34 = arith.muli %31, %33 : vector<8x64xi32>
    %35 = arith.cmpi sge, %32, %34 : vector<8x64xi32>
    %c8_i32_17 = arith.constant 8 : i32
    %36 = vector.broadcast %c8_i32_17 : i32 to vector<8x64xi32>
    %37 = arith.muli %31, %36 : vector<8x64xi32>
    %c8_i32_18 = arith.constant 8 : i32
    %38 = vector.broadcast %c8_i32_18 : i32 to vector<8x64xi32>
    %39 = arith.addi %37, %38 : vector<8x64xi32>
    %40 = arith.cmpi slt, %32, %39 : vector<8x64xi32>
    %41 = arith.andi %35, %40 : vector<8x64xi1>
    %cst_19 = arith.constant 1.250000e-01 : f32
    %cst_20 = arith.constant 0.000000e+00 : f32
    %42 = vector.broadcast %cst_19 : f32 to vector<8x64xf32>
    %43 = vector.broadcast %cst_20 : f32 to vector<8x64xf32>
    %44 = arith.select %41, %42, %43 : vector<8x64xi1>, vector<8x64xf32>
    %cst_21 = arith.constant dense<0.000000e+00> : vector<8x64xf32>
    %45 = tpu.matmul %44, %30, %cst_21 {dimension_numbers = #tpu.dot_dimension_numbers<[1], [0], [0], [1], [0, 0, 1, 1], [], []>} : vector<8x64xf32>, vector<64x64xf32>, vector<8x64xf32> -> vector<8x64xf32>
    %c0_22 = arith.constant 0 : index
    %c0_23 = arith.constant 0 : index
    %46 = vector.load %arg6[%c0_22, %c0_23] : memref<64x128xf32, #tpu.memory_space<vmem>>, vector<64x128xf32>
    %cst_24 = arith.constant dense<0.000000e+00> : vector<8x128xf32>
    %47 = tpu.matmul %45, %46, %cst_24 {dimension_numbers = #tpu.dot_dimension_numbers<[1], [0], [0], [1], [0, 0, 1, 1], [], []>} : vector<8x64xf32>, vector<64x128xf32>, vector<8x128xf32> -> vector<8x128xf32>
    %c2 = arith.constant 2 : index
    %c0_25 = arith.constant 0 : index
    %48 = vector.load %arg10[%c2, %c0_25] : memref<8x128xf32, #tpu.memory_space<vmem>>, vector<1x128xf32>
    %49 = vector.broadcast %48 : vector<1x128xf32> to vector<8x128xf32>
    %50 = arith.addf %47, %49 : vector<8x128xf32>
    %c0_26 = arith.constant 0 : index
    %c0_27 = arith.constant 0 : index
    %51 = vector.load %arg2[%c0_26, %c0_27] : memref<8x16xf32, #tpu.memory_space<vmem>>, vector<8x16xf32>
    %c0_28 = arith.constant 0 : index
    %c0_29 = arith.constant 0 : index
    %52 = vector.load %arg7[%c0_28, %c0_29] : memref<16x128xf32, #tpu.memory_space<vmem>>, vector<16x128xf32>
    %cst_30 = arith.constant dense<0.000000e+00> : vector<8x128xf32>
    %53 = tpu.matmul %51, %52, %cst_30 {dimension_numbers = #tpu.dot_dimension_numbers<[1], [0], [0], [1], [0, 0, 1, 1], [], []>} : vector<8x16xf32>, vector<16x128xf32>, vector<8x128xf32> -> vector<8x128xf32>
    %c3 = arith.constant 3 : index
    %c0_31 = arith.constant 0 : index
    %54 = vector.load %arg10[%c3, %c0_31] : memref<8x128xf32, #tpu.memory_space<vmem>>, vector<1x128xf32>
    %55 = vector.broadcast %54 : vector<1x128xf32> to vector<8x128xf32>
    %56 = arith.addf %53, %55 : vector<8x128xf32>
    %cst_32 = arith.constant 0.000000e+00 : f32
    %57 = vector.broadcast %cst_32 : f32 to vector<8x128xf32>
    %58 = arith.maximumf %56, %57 : vector<8x128xf32>
    %c0_33 = arith.constant 0 : index
    %c0_34 = arith.constant 0 : index
    %59 = vector.load %arg8[%c0_33, %c0_34] : memref<128x128xf32, #tpu.memory_space<vmem>>, vector<128x128xf32>
    %cst_35 = arith.constant dense<0.000000e+00> : vector<8x128xf32>
    %60 = tpu.matmul %50, %59, %cst_35 {dimension_numbers = #tpu.dot_dimension_numbers<[1], [0], [0], [1], [0, 0, 1, 1], [], []>} : vector<8x128xf32>, vector<128x128xf32>, vector<8x128xf32> -> vector<8x128xf32>
    %c0_36 = arith.constant 0 : index
    %c0_37 = arith.constant 0 : index
    %61 = vector.load %arg9[%c0_36, %c0_37] : memref<128x128xf32, #tpu.memory_space<vmem>>, vector<128x128xf32>
    %cst_38 = arith.constant dense<0.000000e+00> : vector<8x128xf32>
    %62 = tpu.matmul %58, %61, %cst_38 {dimension_numbers = #tpu.dot_dimension_numbers<[1], [0], [0], [1], [0, 0, 1, 1], [], []>} : vector<8x128xf32>, vector<128x128xf32>, vector<8x128xf32> -> vector<8x128xf32>
    %63 = arith.addf %60, %62 : vector<8x128xf32>
    %c4 = arith.constant 4 : index
    %c0_39 = arith.constant 0 : index
    %64 = vector.load %arg10[%c4, %c0_39] : memref<8x128xf32, #tpu.memory_space<vmem>>, vector<1x128xf32>
    %65 = vector.broadcast %64 : vector<1x128xf32> to vector<8x128xf32>
    %66 = arith.addf %63, %65 : vector<8x128xf32>
    %cst_40 = arith.constant 0.000000e+00 : f32
    %67 = vector.broadcast %cst_40 : f32 to vector<8x128xf32>
    %68 = arith.maximumf %66, %67 : vector<8x128xf32>
    %c5 = arith.constant 5 : index
    %c0_41 = arith.constant 0 : index
    %69 = vector.load %arg10[%c5, %c0_41] : memref<8x128xf32, #tpu.memory_space<vmem>>, vector<1x128xf32>
    %70 = vector.broadcast %69 : vector<1x128xf32> to vector<8x128xf32>
    %71 = arith.mulf %68, %70 : vector<8x128xf32>
    %cst_42 = arith.constant dense<0.000000e+00> : vector<8xf32>
    %72 = vector.multi_reduction <add>, %71, %cst_42 [1] : vector<8x128xf32> to vector<8xf32>
    %73 = vector.shape_cast %72 : vector<8xf32> to vector<8x1xf32>
    %c6 = arith.constant 6 : index
    %c0_43 = arith.constant 0 : index
    %74 = vector.load %arg10[%c6, %c0_43] : memref<8x128xf32, #tpu.memory_space<vmem>>, vector<1x1xf32>
    %75 = vector.broadcast %74 : vector<1x1xf32> to vector<8x1xf32>
    %76 = arith.addf %73, %75 : vector<8x1xf32>
    %c0_44 = arith.constant 0 : index
    %c0_45 = arith.constant 0 : index
    %77 = vector.load %arg11[%c0_44, %c0_45] : memref<8x1xf32, #tpu.memory_space<vmem>>, vector<8x1xf32>
    tpu.vector_store %arg11[%c0_44, %c0_45], %76 {strides = array<i32>} : memref<8x1xf32, #tpu.memory_space<vmem>>, vector<8x1xf32>,
    return
  }
  func.func @transform_0(%arg0: i32) -> (i32, i32) {
    %c0_i32 = arith.constant 0 : i32
    %c0_i32_0 = arith.constant 0 : i32
    return %arg0, %c0_i32 : i32, i32
  }
  func.func @transform_1(%arg0: i32) -> (i32, i32) {
    %c0_i32 = arith.constant 0 : i32
    %c0_i32_0 = arith.constant 0 : i32
    return %arg0, %c0_i32 : i32, i32
  }
  func.func @transform_2(%arg0: i32) -> (i32, i32) {
    %c0_i32 = arith.constant 0 : i32
    %c0_i32_0 = arith.constant 0 : i32
    %c0_i32_1 = arith.constant 0 : i32
    return %c0_i32, %c0_i32_0 : i32, i32
  }
  func.func @transform_3(%arg0: i32) -> (i32, i32) {
    %c0_i32 = arith.constant 0 : i32
    %c0_i32_0 = arith.constant 0 : i32
    %c0_i32_1 = arith.constant 0 : i32
    return %c0_i32, %c0_i32_0 : i32, i32
  }
  func.func @transform_4(%arg0: i32) -> (i32, i32) {
    %c0_i32 = arith.constant 0 : i32
    %c0_i32_0 = arith.constant 0 : i32
    %c0_i32_1 = arith.constant 0 : i32
    return %c0_i32, %c0_i32_0 : i32, i32
  }
  func.func @transform_5(%arg0: i32) -> (i32, i32) {
    %c0_i32 = arith.constant 0 : i32
    %c0_i32_0 = arith.constant 0 : i32
    %c0_i32_1 = arith.constant 0 : i32
    return %c0_i32, %c0_i32_0 : i32, i32
  }
  func.func @transform_6(%arg0: i32) -> (i32, i32) {
    %c0_i32 = arith.constant 0 : i32
    %c0_i32_0 = arith.constant 0 : i32
    %c0_i32_1 = arith.constant 0 : i32
    return %c0_i32, %c0_i32_0 : i32, i32
  }
  func.func @transform_7(%arg0: i32) -> (i32, i32) {
    %c0_i32 = arith.constant 0 : i32
    %c0_i32_0 = arith.constant 0 : i32
    %c0_i32_1 = arith.constant 0 : i32
    return %c0_i32, %c0_i32_0 : i32, i32
  }
  func.func @transform_8(%arg0: i32) -> (i32, i32) {
    %c0_i32 = arith.constant 0 : i32
    %c0_i32_0 = arith.constant 0 : i32
    %c0_i32_1 = arith.constant 0 : i32
    return %c0_i32, %c0_i32_0 : i32, i32
  }
  func.func @transform_9(%arg0: i32) -> (i32, i32) {
    %c0_i32 = arith.constant 0 : i32
    %c0_i32_0 = arith.constant 0 : i32
    %c0_i32_1 = arith.constant 0 : i32
    return %c0_i32, %c0_i32_0 : i32, i32
  }
  func.func @transform_10(%arg0: i32) -> (i32, i32) {
    %c0_i32 = arith.constant 0 : i32
    %c0_i32_0 = arith.constant 0 : i32
    return %arg0, %c0_i32 : i32, i32
  }
}

</mosaic_0001>

<bundles_post_ra>
// kernel: tpu_custom_call.1
= control target key start
LH: loop header
LB: loop body
LE: loop exit
PB: predicated region body
PF: predicated region fallthrough
CT: control target
= control target key end

     0   :  { %s1289_s13 = smov 0   ;;  %s1900_s0 = inlined_call_operand.vmem [shape: f32[128,12], index: 0, kind: input, shape index: {}]   ;;  %s1901_s1 = inlined_call_operand.vmem [shape: f32[16,16], index: 1, kind: input, shape index: {}]   ;;  %s1902_s2 = inlined_call_operand.vmem [shape: f32[64,2], index: 2, kind: input, shape index: {}]   ;;  %s1903_s3 = inlined_call_operand.vmem [shape: f32[36,32], index: 3, kind: input, shape index: {}]   ;;  %s1904_s4 = inlined_call_operand.vmem [shape: f32[96,64], index: 4, kind: input, shape index: {}]   ;;  %s1905_s5 = inlined_call_operand.vmem [shape: f32[64,128], index: 5, kind: input, shape index: {}]   ;;  %s1906_s6 = inlined_call_operand.vmem [shape: f32[16,128], index: 6, kind: input, shape index: {}]   ;;  %s1907_s7 = inlined_call_operand.vmem [shape: f32[128,128], index: 7, kind: input, shape index: {}]   ;;  %s1908_s8 = inlined_call_operand.vmem [shape: f32[128,128], index: 8, kind: input, shape index: {}]   ;;  %s1909_s9 = inlined_call_operand.vmem [shape: f32[8,128], index: 9, kind: input, shape index: {}]   ;;  %s1910_s10 = inlined_call_operand.vmem [shape: f32[16,1], index: 10, kind: output, shape index: {}]  }
   0x1 LB: > { %s1295_s14 = sadd.s32 4294967295, %s1225_s13   ;;  %p1151_p0 = scmp.ge.s32.totalorder %s1225_s13, 1  ;;  %s1225_s13 = sphi %s1289_s13, %s20_s13  }
   0x2   : > { %p322_p1 = scmp.lt.s32.totalorder %s1225_s13, 3 }
   0x4   : > { %p323_p2 = pnand %p1151_p0, %p322_p1 }
   0x5   : > { %s1152_s19 = sshll.u32 (!%p323_p2), %s1295_s14, 3  ;;  %s1229_s12 = smov (!%p323_p2), 12  }
   0x6   : > { %326 = sbr.rel (%p323_p2) target bundleno = 1234 (0x4d2), region = 60  ;;  %p364_p3 = scmp.lt.s32.totalorder (!%p323_p2), %s1152_s19, 15 }
   0x7   : > { %s1232_s15 = smov (!%p323_p2), 64   ;;  %p369_p4 = scmp.lt.s32.totalorder (!%p323_p2), %s1295_s14, 1 }
   0xb   : > { %v1302_v0 = vld [vmem:[%s1902_s2 + $0x10] sm:$0xff]  ;;  %v377_v1 = vld [vmem:[%s1902_s2] sm:$0xff]  ;;  %v1227_v2 = vmov 1   ;;  %s1912_s19 = smov (!%p364_p3, %s1152_s19), 15  ;;  %v1318_v4 = vld [vmem:[%s1902_s2 + $0x18] sm:$0xff]  ;;  %v1228_v6 = vmov 0   ;;  %v401_v12 = vlaneseq }
   0xc   : > { %1206 = vset.pattern.permute.xlu1 %v1227_v2  ;;  %1205 = vset.pattern.permute.xlu0 %v1227_v2  ;;  %v1312_v3 = vld [vmem:[%s1902_s2 + $0x20] sm:$0xff]  ;;  %v378_v5 = vld [vmem:[%s1902_s2 + $0x8] sm:$0xff]  ;;  %s1153_s26 = sshll.u32 %s1912_s19, 3  ;;  %v1348_v10 = vld [vmem:[%s1902_s2 + $0x30] sm:$0xff]  ;;  %s1230_s19 = smov 24   ;;  %vm581_vm2 = vcmask 97280  }
   0xd   : > { %486 = vperm.xlu1 %1206, %v1302_v0   ;;  %478 = vperm.xlu0 %1205, %v377_v1   ;;  %s1327_s29 = scalar_lea.vmem %s1900_s0, %s1153_s26  ;;  %v1332_v7 = vld [vmem:[%s1902_s2 + $0x28] sm:$0xff]  ;;  %v1354_v11 = vld [vmem:[%s1902_s2 + $0x38] sm:$0xff]  ;;  %v1358_v13 = vshrl.u32 %v401_v12, 7  ;;  %v603_v56 = vld [vmem:[%s1903_s3 + $0x20] sm:$0xf]  ;;  %vm631_vm3 = vcmask 1043456  }
   0xe   : > { %1207 = vset.pattern.permute.xlu2 %v1227_v2  ;;  %v1335_v8 = vld [vmem:[%s1327_s29] sm:$0xff]  ;;  %v1341_v9 = vld [vmem:[%s1327_s29 + $0x8] sm:$0xff]  ;;  %v1368_v17 = vld [vmem:[%s1327_s29 + $0x10] sm:$0xff]  ;;  %1156 = vmatpush.msk.msra.mxu0 %vm631_vm3, %v603_v56  ;;  %vm590_vm4 = vcmask 195584   ;;  %vm606_vm5 = vcmask 293888   ;;  %vm796_vm6 = vcmask 261120  }
   0xf   : > { %494 = vperm.xlu2 %1207, %v1312_v3   ;;  %v460_v14 = vrot.slane %v1335_v8, 1  ;;  %v461_v15 = vrot.slane %v1341_v9, 1  ;;  %vm468_vm0 = vcmp.lt.s32.totalorder %v1358_v13, 7  ;;  %v1371_v18 = vld [vmem:[%s1327_s29 + $0x18] sm:$0xff]  ;;  %v1374_v19 = vld [vmem:[%s1327_s29 + $0x20] sm:$0xff]  ;;  %v462_v23 = vrot.slane %v1368_v17, 1 }
  0x10   : > { %v463_v24 = vrot.slane %v1371_v18, 1  ;;  %v464_v25 = vrot.slane %v1374_v19, 1  ;;  %v1388_v27 = vld [vmem:[%s1327_s29 + $0x28] sm:$0xff]  ;;  %v1391_v28 = vld [vmem:[%s1327_s29 + $0x38] sm:$0xff]  ;;  %v393_v29 = vrot.slane %v1335_v8, 7  ;;  %v394_v33 = vrot.slane %v1341_v9, 7 }
  0x11   : > { %v475_v16 = vsel %vm468_vm0, %v460_v14, %v461_v15  ;;  %v474_v31 = vsel %vm468_vm0, %v461_v15, %v462_v23  ;;  %v400_v32 = vrot.slane %v1391_v28, 7  ;;  %vm403_vm1 = vcmp.lt.s32.totalorder %v1358_v13, 1  ;;  %v1428_v46 = vld [vmem:[%s1327_s29 + $0x30] sm:$0xff]  ;;  %v602_v57 = vld [vmem:[%s1903_s3 + $0x18] sm:$0xff]  ;;  %v600_v62 = vld [vmem:[%s1903_s3 + $0x8] sm:$0xff]  ;;  %s1914_s14 = smov (!%p369_p4, %s1295_s14), 1 }
  0x12   : > { %v472_v30 = vsel %vm468_vm0, %v463_v24, %v464_v25  ;;  %v465_v36 = vrot.slane %v1388_v27, 1  ;;  %v410_v41 = vsel %vm403_vm1, %v393_v29, %v394_v33  ;;  %v473_v43 = vsel %vm468_vm0, %v462_v23, %v463_v24  ;;  %v601_v60 = vld [vmem:[%s1903_s3 + $0x10] sm:$0xff]  ;;  %647 = vmatpush.msra.mxu0 %v602_v57  ;;  %s1154_s24 = sshll.u32 %s1914_s14, 3 }
  0x13   : > { %v411_v40 = vsel %vm403_vm1, %v400_v32, %v393_v29  ;;  %v466_v51 = vrot.slane %v1428_v46, 1  ;;  %v467_v54 = vrot.slane %v1391_v28, 1  ;;  %vm805_vm7 = vcmask 523264   ;;  %s372_s29 = scalar_lea.vmem %s1901_s1, %s1154_s24  ;;  %s376_s22 = scalar_lea.vmem %s1910_s10, %s1154_s24 }
  0x14   : > { %v471_v42 = vsel %vm468_vm0, %v464_v25, %v465_v36  ;;  %648 = vmatpush.msra.mxu0 %v601_v60  ;;  %vm828_vm8 = vcmask 785408   ;;  %vm971_vm12 = vcmask 130048   ;;  %vm1080_vm13 = vcmask 7168  }
  0x15   : > { %490 = vperm.xlu1 %1206, %v1318_v4   ;;  %482 = vperm.xlu0 %1205, %v378_v5   ;;  %v470_v52 = vsel %vm468_vm0, %v465_v36, %v466_v51  ;;  %v469_v58 = vsel %vm468_vm0, %v466_v51, %v467_v54  ;;  %v397_v36 = vrot.slane %v1374_v19, 7 }
  0x16   : > { %649 = vmatpush.msra.mxu0 %v600_v62 }
  0x17   : > { %1208 = vset.pattern.permute.xlu2 %v1228_v6 }
  0x18   : > { %414 = vperm.xlu2 %1208, %v377_v1  }
  0x1d   : > { %498 = vperm.xlu0 %1205, %v1332_v7   ;;  %525 = vrot.lane.b32.xlu1 %v1335_v8, %s1229_s12 }
  0x20   : > { %527 = vrot.lane.b32.xlu2 %v1341_v9, %s1229_s12 }
  0x25   : > { %502 = vperm.xlu1 %1206, %v1348_v10   ;;  %1209 = vset.pattern.permute.xlu0 %v1228_v6 }
  0x26   : > { %419 = vperm.xlu0 %1209, %v378_v5  }
  0x2d   : > { %1211 = vset.pattern.permute.xlu1 %v1228_v6 }
  0x2e   : > { %1210 = vset.pattern.permute.xlu0 %v1227_v2  ;;  %v599_v2 = vld [vmem:[%s1903_s3] sm:$0xff] }
  0x2f   : > { %506 = vperm.xlu0 %1210, %v1354_v11   ;;  %650 = vmatpush.msra.mxu0 %v599_v2 }
  0x69   : > { %v1384_v26 = vpop.permute.xlu2 %494 }
  0x6a   : > { %v513_v45 = vmul.f32 %v1384_v26, %v471_v42 }
  0x72   : > { %v1408_v39 = vpop.permute.xlu2 %414 }
  0x73   : > { %v452_v44 = vmul.f32 %v1408_v39, %v411_v40 }
  0x7f   : > { %v1376_v20 = vpop.permute.xlu1 %486  ;;  %v1378_v21 = vpop.permute.xlu0 %478 }
  0x80   : > { %v509_v22 = vmul.f32 %v1378_v21, %v475_v16  ;;  %v511_v47 = vmul.f32 %v1376_v20, %v473_v43 }
  0x82   : > { %557 = vrot.lane.b32.xlu2 %v509_v22, %s1230_s19 }
  0x87   : > { %v1401_v34 = vpop.permute.xlu1 %490  ;;  %v1403_v35 = vpop.permute.xlu0 %482 }
  0x88   : > { %v512_v37 = vmul.f32 %v1401_v34, %v472_v30  ;;  %v510_v38 = vmul.f32 %v1403_v35, %v474_v31 }
  0x8a   : > { %563 = vrot.lane.b32.xlu0 %v512_v37, %s1230_s19  ;;  %559 = vrot.lane.b32.xlu1 %v510_v38, %s1230_s19 }
  0x8b   : > { %424 = vperm.xlu2 %1208, %v1302_v0   ;;  %v476_v0 = vsel %vm468_vm0, %v467_v54, %v460_v14 }
  0x8f   : > { %v526_v48 = vpop.permute.xlu1 %525  ;;  %v1432_v50 = vpop.permute.xlu0 %498 }
  0x90   : > { %v582_v49 = vsel %vm581_vm2, %v452_v44, %v526_v48  ;;  %v514_v53 = vmul.f32 %v1432_v50, %v470_v52  ;;  %v398_v44 = vrot.slane %v1388_v27, 7 }
  0x92   : > { %565 = vrot.lane.b32.xlu0 %v513_v45, %s1230_s19  ;;  %529 = vrot.lane.b32.xlu1 %v1368_v17, %s1229_s12  ;;  %v406_v48 = vsel %vm403_vm1, %v397_v36, %v398_v44 }
  0x93   : > { %561 = vrot.lane.b32.xlu2 %v511_v47, %s1230_s19 }
  0x97   : > { %v1457_v59 = vpop.permute.xlu1 %502 }
  0x98   : > { %v1443_v55 = vpop.permute.xlu0 %419  ;;  %v515_v61 = vmul.f32 %v1457_v59, %v469_v58 }
  0x9a   : > { %567 = vrot.lane.b32.xlu0 %v514_v53, %s1230_s19  ;;  %429 = vperm.xlu1 %1211, %v1318_v4   ;;  %v399_v53 = vrot.slane %v1428_v46, 7 }
  0x9b   : > { %531 = vrot.lane.b32.xlu2 %v1371_v18, %s1229_s12 }
  0x9c   : > { %v405_v56 = vsel %vm403_vm1, %v398_v44, %v399_v53 }
  0xa1   : > { %v1468_v63 = vpop.permute.xlu0 %506 }
  0xa2   : > { %434 = vperm.xlu1 %1211, %v1312_v3   ;;  %569 = vrot.lane.b32.xlu0 %v515_v61, %s1230_s19  ;;  %v516_v1 = vmul.f32 %v1468_v63, %v476_v0  ;;  %v528_v3 = vpop.permute.xlu2 %527 }
  0xa3   : > { %533 = vrot.lane.b32.xlu2 %v1374_v19, %s1229_s12 }
  0xaa   : > { %439 = vperm.xlu1 %1211, %v1332_v7   ;;  %571 = vrot.lane.b32.xlu0 %v516_v1, %s1230_s19  ;;  %v453_v7 = vmul.f32 %v1443_v55, %v410_v41 }
  0xab   : > { %535 = vrot.lane.b32.xlu2 %v1388_v27, %s1229_s12 }
  0xac   : > { %v583_v8 = vsel %vm581_vm2, %v453_v7, %v528_v3 }
  0xb2   : > { %444 = vperm.xlu1 %1211, %v1348_v10   ;;  %v395_v10 = vrot.slane %v1368_v17, 7  ;;  %v396_v17 = vrot.slane %v1371_v18, 7 }
  0xb3   : > { %537 = vrot.lane.b32.xlu2 %v1428_v46, %s1229_s12  ;;  %v404_v46 = vsel %vm403_vm1, %v399_v53, %v400_v32 }
  0xb4   : > { %v409_v16 = vsel %vm403_vm1, %v394_v33, %v395_v10  ;;  %v408_v31 = vsel %vm403_vm1, %v395_v10, %v396_v17  ;;  %v407_v18 = vsel %vm403_vm1, %v396_v17, %v397_v36 }
  0xba   : > { %449 = vperm.xlu1 %1211, %v1354_v11  }
  0xbb   : > { %539 = vrot.lane.b32.xlu2 %v1391_v28, %s1229_s12  ;;  %s1231_s12 = smov 32  }
  0xdc   : > { %v558_v4 = vpop.permute.xlu2 %557 }
  0xdd   : > { %v591_v5 = vsel %vm590_vm4, %v582_v49, %v558_v4 }
  0xde   : > { %1157 = vmatmul.msk.f32.vlgmr.msra.gmra.mxu0 %vm606_vm5, %v591_v5 }
  0xe5   : > { %v1492_v6 = vpop.permute.xlu2 %424 }
  0xe6   : > { %v454_v22 = vmul.f32 %v1492_v6, %v409_v16 }
  0xed   : > { %v562_v11 = vpop.permute.xlu2 %561 }
  0xf5   : > { %v532_v24 = vpop.permute.xlu2 %531 }
  0xfc   : > { %v560_v14 = vpop.permute.xlu1 %559  ;;  %v564_v30 = vpop.permute.xlu0 %563 }
  0xfd   : > { %v592_v15 = vsel %vm590_vm4, %v583_v8, %v560_v14  ;;  %v534_v37 = vpop.permute.xlu2 %533  ;;  %v1556_v8 = vld [vmem:[%s1909_s9] ss:$0 sm:$0xff] }
  0xfe   : > { %1158 = vmatmul.msk.f32.gmra.mxu0 %vm606_vm5, %v592_v15 }
 0x104   : > { %v530_v23 = vpop.permute.xlu1 %529  ;;  %v566_v41 = vpop.permute.xlu0 %565 }
 0x105   : > { %v584_v25 = vsel %vm581_vm2, %v454_v22, %v530_v23  ;;  %v536_v47 = vpop.permute.xlu2 %535 }
 0x106   : > { %v593_v29 = vsel %vm590_vm4, %v584_v25, %v562_v11 }
 0x107   : > { %1159 = vmatmul.msk.f32.gmra.mxu0 %vm606_vm5, %v593_v29 }
 0x10c   : > { %v1510_v9 = vpop.permute.xlu1 %429  ;;  %v568_v49 = vpop.permute.xlu0 %567 }
 0x10d   : > { %v455_v33 = vmul.f32 %v1510_v9, %v408_v31  ;;  %v538_v57 = vpop.permute.xlu2 %537 }
 0x10f   : > { %v585_v38 = vsel %vm581_vm2, %v455_v33, %v532_v24 }
 0x110   : > { %v594_v40 = vsel %vm590_vm4, %v585_v38, %v564_v30 }
 0x111   : > { %1160 = vmatmul.msk.f32.gmra.mxu0 %vm606_vm5, %v594_v40 }
 0x114   : > { %v1519_v42 = vpop.permute.xlu1 %434  ;;  %v570_v60 = vpop.permute.xlu0 %569 }
 0x115   : > { %v456_v43 = vmul.f32 %v1519_v42, %v407_v18  ;;  %v540_v2 = vpop.permute.xlu2 %539 }
 0x117   : > { %v586_v45 = vsel %vm581_vm2, %v456_v43, %v534_v37 }
 0x118   : > { %v595_v19 = vsel %vm590_vm4, %v586_v45, %v566_v41 }
 0x119   : > { %1161 = vmatmul.msk.f32.gmra.mxu0 %vm606_vm5, %v595_v19 }
 0x11c   : > { %v1528_v51 = vpop.permute.xlu1 %439  ;;  %v572_v4 = vpop.permute.xlu0 %571 }
 0x11d   : > { %v457_v52 = vmul.f32 %v1528_v51, %v406_v48 }
 0x11f   : > { %v587_v54 = vsel %vm581_vm2, %v457_v52, %v536_v47 }
 0x120   : > { %v596_v27 = vsel %vm590_vm4, %v587_v54, %v568_v49 }
 0x121   : > { %1162 = vmatmul.msk.f32.gmra.mxu0 %vm606_vm5, %v596_v27 }
 0x124   : > { %v1537_v58 = vpop.permute.xlu1 %444 }
 0x125   : > { %v458_v61 = vmul.f32 %v1537_v58, %v405_v56 }
 0x127   : > { %v588_v62 = vsel %vm581_vm2, %v458_v61, %v538_v57 }
 0x128   : > { %v597_v0 = vsel %vm590_vm4, %v588_v62, %v570_v60 }
 0x129   : > { %1163 = vmatmul.msk.f32.gmra.mxu0 %vm606_vm5, %v597_v0  ;;  %v825_v0 = vld [vmem:[%s1904_s4 + $0x58] sm:$0xff] }
 0x12a   : > { %857 = vmatpush.msra.mxu1 %v825_v0  ;;  %1178 = vmatpush.msra.mxu3 %v825_v0 }
 0x12c   : > { %v1547_v1 = vpop.permute.xlu1 %449 }
 0x12d   : > { %v459_v3 = vmul.f32 %v1547_v1, %v404_v46  ;;  %v824_v46 = vld [vmem:[%s1904_s4 + $0x50] sm:$0xff] }
 0x12e   : > { %858 = vmatpush.msra.mxu1 %v824_v46  ;;  %1179 = vmatpush.msra.mxu3 %v824_v46 }
 0x12f   : > { %v589_v5 = vsel %vm581_vm2, %v459_v3, %v540_v2 }
 0x130   : > { %v598_v7 = vsel %vm590_vm4, %v589_v5, %v572_v4  ;;  %v823_v4 = vld [vmem:[%s1904_s4 + $0x48] sm:$0xff] }
 0x131   : > { %1164 = vmatmul.msk.f32.gmra.mxu0 %vm606_vm5, %v598_v7  ;;  %v822_v7 = vld [vmem:[%s1904_s4 + $0x40] sm:$0xff]  ;;  %859 = vmatpush.msra.mxu1 %v823_v4 }
 0x132   : > { %1180 = vmatpush.msra.mxu3 %v823_v4 }
 0x133   : > { %860 = vmatpush.msra.mxu1 %v822_v7 }
 0x134   : > { %1181 = vmatpush.msra.mxu3 %v822_v7 }
 0x15b   : > { %v652_v28 = vpop.f32.mrf.mxu0 }
 0x15c   : > { %v653_v32 = vadd.f32 %v1556_v8, %v652_v28 }
 0x15e   : > { %v1559_v10 = vmax.f32 %v653_v32, 0.0 }
 0x160   : > { %740 = vrot.lane.b32.xlu1 %v1559_v10, %s1231_s12  ;;  %v684_v16 = vrot.slane %v1559_v10, 7  ;;  %v708_v22 = vrot.slane %v1559_v10, 1 }
 0x17b   : > { %v655_v11 = vpop.f32.mrf.mxu0 }
 0x17c   : > { %v656_v14 = vadd.f32 %v1556_v8, %v655_v11 }
 0x17e   : > { %v677_v15 = vmax.f32 %v656_v14, 0.0  ;;  %v821_v14 = vld [vmem:[%s1904_s4 + $0x38] sm:$0xff] }
 0x17f   : > { %861 = vmatpush.msra.mxu1 %v821_v14  ;;  %1182 = vmatpush.msra.mxu3 %v821_v14 }
 0x180   : > { %v685_v23 = vrot.slane %v677_v15, 7  ;;  %v709_v24 = vrot.slane %v677_v15, 1  ;;  %742 = vrot.lane.b32.xlu0 %v677_v15, %s1231_s12 }
 0x182   : > { %v722_v25 = vsel %vm468_vm0, %v708_v22, %v709_v24  ;;  %v1575_v29 = vsel %vm403_vm1, %v684_v16, %v685_v23 }
 0x183   : > { %v724_v17 = vmul.f32 %v722_v25, %v1378_v21  ;;  %v701_v10 = vmul.f32 %v1575_v29, %v1443_v55 }
 0x184   : > { %v658_v30 = vpop.f32.mrf.mxu0 }
 0x185   : > { %v659_v31 = vadd.f32 %v1556_v8, %v658_v30  ;;  %772 = vrot.lane.b32.xlu2 %v724_v17, %s1232_s15 }
 0x187   : > { %v678_v33 = vmax.f32 %v659_v31, 0.0  ;;  %v820_v31 = vld [vmem:[%s1904_s4 + $0x30] sm:$0xff] }
 0x188   : > { %862 = vmatpush.msra.mxu1 %v820_v31  ;;  %1183 = vmatpush.msra.mxu3 %v820_v31 }
 0x189   : > { %v686_v36 = vrot.slane %v678_v33, 7  ;;  %v710_v37 = vrot.slane %v678_v33, 1 }
 0x18b   : > { %v721_v38 = vsel %vm468_vm0, %v709_v24, %v710_v37  ;;  %v1584_v40 = vsel %vm403_vm1, %v685_v23, %v686_v36 }
 0x18c   : > { %v725_v41 = vmul.f32 %v721_v38, %v1403_v35 }
 0x18d   : > { %744 = vrot.lane.b32.xlu2 %v678_v33, %s1231_s12 }
 0x18e   : > { %v661_v21 = vpop.f32.mrf.mxu0  ;;  %774 = vrot.lane.b32.xlu1 %v725_v41, %s1232_s15  ;;  %v818_v41 = vld [vmem:[%s1904_s4 + $0x20] sm:$0xff] }
 0x18f   : > { %v662_v18 = vadd.f32 %v1556_v8, %v661_v21  ;;  %v815_v21 = vld [vmem:[%s1904_s4 + $0x8] sm:$0xff] }
 0x191   : > { %v679_v43 = vmax.f32 %v662_v18, 0.0 }
 0x193   : > { %v687_v44 = vrot.slane %v679_v43, 7  ;;  %v711_v45 = vrot.slane %v679_v43, 1 }
 0x195   : > { %v720_v19 = vsel %vm468_vm0, %v710_v37, %v711_v45  ;;  %v1594_v47 = vsel %vm403_vm1, %v686_v36, %v687_v44 }
 0x196   : > { %v664_v48 = vpop.f32.mrf.mxu0  ;;  %v726_v35 = vmul.f32 %v720_v19, %v1376_v20 }
 0x197   : > { %v665_v49 = vadd.f32 %v1556_v8, %v664_v48 }
 0x198   : > { %776 = vrot.lane.b32.xlu0 %v726_v35, %s1232_s15 }
 0x199   : > { %v1599_v52 = vmax.f32 %v665_v49, 0.0 }
 0x19b   : > { %v688_v53 = vrot.slane %v1599_v52, 7  ;;  %v712_v3 = vrot.slane %v1599_v52, 1 }
 0x19d   : > { %v1604_v54 = vsel %vm403_vm1, %v687_v44, %v688_v53  ;;  %v719_v11 = vsel %vm468_vm0, %v711_v45, %v712_v3 }
 0x19e   : > { %v667_v27 = vpop.f32.mrf.mxu0  ;;  %v727_v24 = vmul.f32 %v719_v11, %v1401_v34 }
 0x19f   : > { %v668_v56 = vadd.f32 %v1556_v8, %v667_v27 }
 0x1a0   : > { %746 = vrot.lane.b32.xlu0 %v679_v43, %s1231_s12  ;;  %v814_v43 = vld [vmem:[%s1904_s4] sm:$0xff] }
 0x1a1   : > { %v1608_v57 = vmax.f32 %v668_v56, 0.0 }
 0x1a3   : > { %v689_v20 = vrot.slane %v1608_v57, 7 }
 0x1a5   : > { %v1613_v60 = vsel %vm403_vm1, %v688_v53, %v689_v20 }
 0x1a6   : > { %v670_v61 = vpop.f32.mrf.mxu0 }
 0x1a7   : > { %v671_v62 = vadd.f32 %v1556_v8, %v670_v61 }
 0x1a9   : > { %v682_v2 = vmax.f32 %v671_v62, 0.0 }
 0x1ab   : > { %v690_v5 = vrot.slane %v682_v2, 7  ;;  %752 = vrot.lane.b32.xlu1 %v682_v2, %s1231_s12  ;;  %v714_v25 = vrot.slane %v682_v2, 1 }
 0x1ad   : > { %v1632_v28 = vsel %vm403_vm1, %v689_v20, %v690_v5 }
 0x1ae   : > { %v673_v32 = vpop.f32.mrf.mxu0  ;;  %v706_v55 = vmul.f32 %v1632_v28, %v1537_v58 }
 0x1af   : > { %v674_v15 = vadd.f32 %v1556_v8, %v673_v32  ;;  %v819_v8 = vld [vmem:[%s1904_s4 + $0x28] sm:$0xff] }
 0x1b0   : > { %863 = vmatpush.msra.mxu1 %v819_v8  ;;  %1184 = vmatpush.msra.mxu3 %v819_v8 }
 0x1b1   : > { %v683_v23 = vmax.f32 %v674_v15, 0.0 }
 0x1b2   : > { %864 = vmatpush.msra.mxu1 %v818_v41  ;;  %1185 = vmatpush.msra.mxu3 %v818_v41  ;;  %v935_v41 = vld [vmem:[%s1905_s5 + $0x10] sm:$0xff] }
 0x1b3   : > { %v691_v17 = vrot.slane %v683_v23, 7  ;;  %v715_v30 = vrot.slane %v683_v23, 1  ;;  %778 = vrot.lane.b32.xlu1 %v727_v24, %s1232_s15 }
 0x1b5   : > { %v723_v34 = vsel %vm468_vm0, %v715_v30, %v708_v22  ;;  %v716_v33 = vsel %vm468_vm0, %v714_v25, %v715_v30  ;;  %v1656_v36 = vsel %vm403_vm1, %v690_v5, %v691_v17  ;;  %v817_v22 = vld [vmem:[%s1904_s4 + $0x18] sm:$0xff]  ;;  %v699_v48 = vsel %vm403_vm1, %v691_v17, %v684_v16 }
 0x1b6   : > { %v731_v37 = vmul.f32 %v723_v34, %v1468_v63  ;;  %v730_v38 = vmul.f32 %v716_v33, %v1457_v59  ;;  %v816_v59 = vld [vmem:[%s1904_s4 + $0x10] sm:$0xff]  ;;  %865 = vmatpush.msra.mxu1 %v817_v22  ;;  %v713_v63 = vrot.slane %v1608_v57, 1  ;;  %1186 = vmatpush.msra.mxu3 %v817_v22  ;;  %v707_v58 = vmul.f32 %v1656_v36, %v1547_v1  ;;  %v940_v34 = vld [vmem:[%s1905_s5 + $0x38] sm:$0xff]  ;;  %v937_v36 = vld [vmem:[%s1905_s5 + $0x20] sm:$0xff] }
 0x1b7   : > { %v705_v1 = vmul.f32 %v1613_v60, %v1528_v51  ;;  %v939_v33 = vld [vmem:[%s1905_s5 + $0x30] sm:$0xff]  ;;  %v938_v60 = vld [vmem:[%s1905_s5 + $0x28] sm:$0xff]  ;;  %v1213_v22 = vld [vmem:[%s1909_s9 + $0x1] ss:$0 sm:$0xff] }
 0x1b8   : > { %786 = vrot.lane.b32.xlu0 %v731_v37, %s1232_s15  ;;  %784 = vrot.lane.b32.xlu2 %v730_v38, %s1232_s15  ;;  %v717_v18 = vsel %vm468_vm0, %v713_v63, %v714_v25  ;;  %v718_v45 = vsel %vm468_vm0, %v712_v3, %v713_v63  ;;  %v936_v37 = vld [vmem:[%s1905_s5 + $0x18] sm:$0xff]  ;;  %v934_v63 = vld [vmem:[%s1905_s5 + $0x8] sm:$0xff] }
 0x1b9   : > { %866 = vmatpush.msra.mxu1 %v816_v59  ;;  %1187 = vmatpush.msra.mxu3 %v816_v59  ;;  %v729_v44 = vmul.f32 %v717_v18, %v1432_v50  ;;  %v728_v19 = vmul.f32 %v718_v45, %v1384_v26  ;;  %v700_v50 = vmul.f32 %v699_v48, %v1408_v39 }
 0x1bb   : > { %748 = vrot.lane.b32.xlu1 %v1599_v52, %s1231_s12  ;;  %867 = vmatpush.msra.mxu1 %v815_v21 }
 0x1bc   : > { %1188 = vmatpush.msra.mxu3 %v815_v21 }
 0x1bd   : > { %868 = vmatpush.msra.mxu1 %v814_v43 }
 0x1be   : > { %1189 = vmatpush.msra.mxu3 %v814_v43  ;;  %v933_v43 = vld [vmem:[%s1905_s5] sm:$0xff] }
 0x1c0   : > { %750 = vrot.lane.b32.xlu0 %v1608_v57, %s1231_s12  ;;  %754 = vrot.lane.b32.xlu2 %v683_v23, %s1231_s12  ;;  %v702_v57 = vmul.f32 %v1584_v40, %v1492_v6  ;;  %v703_v6 = vmul.f32 %v1594_v47, %v1510_v9  ;;  %v704_v9 = vmul.f32 %v1604_v54, %v1519_v42 }
 0x1c1   : > { %954 = vmatpush.msrb.mxu3 %v940_v34  ;;  %v998_v34 = vld [vmem:[%s1907_s7 + $0x10] sm:$0xff] }
 0x1c3   : > { %782 = vrot.lane.b32.xlu1 %v729_v44, %s1232_s15  ;;  %955 = vmatpush.msrb.mxu3 %v939_v33 }
 0x1c5   : > { %956 = vmatpush.msrb.mxu3 %v938_v60 }
 0x1c7   : > { %957 = vmatpush.msrb.mxu3 %v937_v36 }
 0x1c8   : > { %780 = vrot.lane.b32.xlu2 %v728_v19, %s1232_s15  ;;  %v904_v19 = vmul.u32 8, %v1358_v13 }
 0x1c9   : > { %958 = vmatpush.msrb.mxu3 %v936_v37 }
 0x1cb   : > { %959 = vmatpush.msrb.mxu3 %v935_v41  ;;  %v997_v41 = vld [vmem:[%s1907_s7 + $0x8] sm:$0xff] }
 0x1cd   : > { %960 = vmatpush.msrb.mxu3 %v934_v63  ;;  %v1215_v63 = vld [vmem:[%s1909_s9 + $0x2] ss:$0 sm:$0xff] }
 0x1cf   : > { %961 = vmatpush.msrb.mxu3 %v933_v43 }
 0x1d2   : > { %v741_v35 = vpop.permute.xlu1 %740 }
 0x1d3   : > { %v797_v49 = vsel %vm796_vm6, %v700_v50, %v741_v35 }
 0x1df   : > { %v773_v52 = vpop.permute.xlu2 %772 }
 0x1e0   : > { %v806_v53 = vsel %vm805_vm7, %v797_v49, %v773_v52 }
 0x1e1   : > { %1165 = vmatmul.msk.f32.vlgmr.msra.gmra.mxu1 %vm828_vm8, %v806_v53  ;;  %v903_v53 = vand.u32 127, %v401_v12 }
 0x1e3   : > { %vm905_vm9 = vcmp.ge.s32.totalorder %v903_v53, %v904_v19 }
 0x1e7   : > { %v745_v39 = vpop.permute.xlu2 %744 }
 0x1e8   : > { %v799_v20 = vsel %vm796_vm6, %v702_v57, %v745_v39 }
 0x1f2   : > { %v743_v26 = vpop.permute.xlu0 %742 }
 0x1f3   : > { %v798_v27 = vsel %vm796_vm6, %v701_v10, %v743_v26  ;;  %v906_v26 = vadd.s32 8, %v904_v19 }
 0x1f5   : > { %vm907_vm10 = vcmp.lt.s32.totalorder %v903_v53, %v906_v26 }
 0x1f6   : > { %vm908_vm11 = vmand %vm905_vm9, %vm907_vm10 }
 0x200   : > { %v775_v16 = vpop.permute.xlu1 %774 }
 0x201   : > { %v807_v56 = vsel %vm805_vm7, %v798_v27, %v775_v16 }
 0x202   : > { %1166 = vmatmul.msk.f32.gmra.mxu1 %vm828_vm8, %v807_v56 }
 0x20a   : > { %v777_v61 = vpop.permute.xlu0 %776 }
 0x20b   : > { %v808_v62 = vsel %vm805_vm7, %v799_v20, %v777_v61  ;;  %v1233_v20 = vmov 0.0  }
 0x20c   : > { %1167 = vmatmul.msk.f32.gmra.mxu1 %vm828_vm8, %v808_v62  ;;  %v909_v61 = vsel %vm908_vm11, 0.125, %v1233_v20  ;;  %v968_v62 = vld [vmem:[%s1906_s6 + $0x8] sm:$0xff] }
 0x212   : > { %v785_v0 = vpop.permute.xlu2 %784  ;;  %v747_v3 = vpop.permute.xlu0 %746 }
 0x213   : > { %v800_v4 = vsel %vm796_vm6, %v703_v6, %v747_v3  ;;  %v1010_v3 = vld [vmem:[%s1907_s7 + $0x70] sm:$0xff]  ;;  %v1025_v6 = vld [vmem:[%s1908_s8 + $0x68] sm:$0xff] }
 0x21a   : > { %v755_v40 = vpop.permute.xlu2 %754 }
 0x21b   : > { %v804_v28 = vsel %vm796_vm6, %v707_v58, %v755_v40  ;;  %v1009_v40 = vld [vmem:[%s1907_s7 + $0x68] sm:$0xff]  ;;  %v1007_v58 = vld [vmem:[%s1907_s7 + $0x58] sm:$0xff] }
 0x21d   : > { %v753_v29 = vpop.permute.xlu1 %752 }
 0x21e   : > { %v803_v46 = vsel %vm796_vm6, %v706_v55, %v753_v29  ;;  %v966_v55 = vld [vmem:[%s372_s29] sm:$0xff]  ;;  %v1027_v29 = vld [vmem:[%s1908_s8 + $0x78] sm:$0xff] }
 0x21f   : > { %v812_v2 = vsel %vm805_vm7, %v803_v46, %v785_v0  ;;  %v967_v0 = vld [vmem:[%s1906_s6] sm:$0xff]  ;;  %v1011_v46 = vld [vmem:[%s1907_s7 + $0x78] sm:$0xff] }
 0x220   : > { %1171 = vmatmul.msk.f32.vlgmr.msra.gmra.mxu3 %vm828_vm8, %v812_v2  ;;  %v1026_v2 = vld [vmem:[%s1908_s8 + $0x70] sm:$0xff] }
 0x221   : > { %1028 = vmatpush.msra.mxu3 %v1027_v29 }
 0x222   : > { %v781_v14 = vpop.permute.xlu2 %780 }
 0x223   : > { %1029 = vmatpush.msra.mxu3 %v1026_v2 }
 0x225   : > { %v779_v5 = vpop.permute.xlu1 %778  ;;  %1030 = vmatpush.msra.mxu3 %v1025_v6 }
 0x226   : > { %v809_v7 = vsel %vm805_vm7, %v800_v4, %v779_v5  ;;  %v1024_v4 = vld [vmem:[%s1908_s8 + $0x60] sm:$0xff] }
 0x227   : > { %1168 = vmatmul.msk.f32.gmra.mxu1 %vm828_vm8, %v809_v7  ;;  %v1008_v5 = vld [vmem:[%s1907_s7 + $0x60] sm:$0xff]  ;;  %v1023_v7 = vld [vmem:[%s1908_s8 + $0x58] sm:$0xff]  ;;  %1031 = vmatpush.msra.mxu3 %v1024_v4 }
 0x229   : > { %1032 = vmatpush.msra.mxu3 %v1023_v7 }
 0x22a   : > { %v787_v32 = vpop.permute.xlu0 %786 }
 0x22b   : > { %v813_v11 = vsel %vm805_vm7, %v804_v28, %v787_v32  ;;  %v1022_v28 = vld [vmem:[%s1908_s8 + $0x50] sm:$0xff] }
 0x22c   : > { %1172 = vmatmul.msk.f32.gmra.mxu3 %vm828_vm8, %v813_v11  ;;  %v1006_v32 = vld [vmem:[%s1907_s7 + $0x50] sm:$0xff]  ;;  %v1021_v11 = vld [vmem:[%s1908_s8 + $0x48] sm:$0xff] }
 0x22d   : > { %v749_v47 = vpop.permute.xlu1 %748  ;;  %1033 = vmatpush.msra.mxu3 %v1022_v28 }
 0x22e   : > { %v801_v15 = vsel %vm796_vm6, %v704_v9, %v749_v47  ;;  %v1005_v9 = vld [vmem:[%s1907_s7 + $0x48] sm:$0xff]  ;;  %v1020_v47 = vld [vmem:[%s1908_s8 + $0x40] sm:$0xff] }
 0x22f   : > { %v810_v23 = vsel %vm805_vm7, %v801_v15, %v781_v14  ;;  %v1004_v14 = vld [vmem:[%s1907_s7 + $0x40] sm:$0xff]  ;;  %1034 = vmatpush.msra.mxu3 %v1021_v11  ;;  %v1019_v15 = vld [vmem:[%s1908_s8 + $0x38] sm:$0xff] }
 0x230   : > { %1169 = vmatmul.msk.f32.gmra.mxu1 %vm828_vm8, %v810_v23  ;;  %v1003_v23 = vld [vmem:[%s1907_s7 + $0x38] sm:$0xff] }
 0x231   : > { %1035 = vmatpush.msra.mxu3 %v1020_v47 }
 0x232   : > { %v751_v24 = vpop.permute.xlu0 %750 }
 0x233   : > { %v802_v25 = vsel %vm796_vm6, %v705_v1, %v751_v24  ;;  %v1018_v24 = vld [vmem:[%s1908_s8 + $0x30] sm:$0xff]  ;;  %1036 = vmatpush.msra.mxu3 %v1019_v15 }
 0x234   : > { %v1002_v1 = vld [vmem:[%s1907_s7 + $0x30] sm:$0xff] }
 0x235   : > { %v783_v17 = vpop.permute.xlu1 %782  ;;  %1037 = vmatpush.msra.mxu3 %v1018_v24 }
 0x236   : > { %v811_v30 = vsel %vm805_vm7, %v802_v25, %v783_v17  ;;  %v1017_v25 = vld [vmem:[%s1908_s8 + $0x28] sm:$0xff] }
 0x237   : > { %v1001_v17 = vld [vmem:[%s1907_s7 + $0x28] sm:$0xff]  ;;  %1038 = vmatpush.msra.mxu3 %v1017_v25 }
 0x238   : > { %1170 = vmatmul.msk.f32.gmra.mxu1 %vm828_vm8, %v811_v30  ;;  %v1016_v30 = vld [vmem:[%s1908_s8 + $0x20] sm:$0xff] }
 0x239   : > { %1039 = vmatpush.msra.mxu3 %v1016_v30 }
 0x25e   : > { %v870_v42 = vpop.f32.mrf.mxu1 }
 0x25f   : > { %v871_v13 = vadd.f32 %v1213_v22, %v870_v42  ;;  %v1000_v42 = vld [vmem:[%s1907_s7 + $0x20] sm:$0xff] }
 0x261   : > { %v894_v12 = vmax.f32 %v871_v13, 0.0 }
 0x27f   : > { %v873_v54 = vpop.f32.mrf.mxu1 }
 0x280   : > { %v874_v16 = vadd.f32 %v1213_v22, %v873_v54  ;;  %v1015_v54 = vld [vmem:[%s1908_s8 + $0x18] sm:$0xff] }
 0x281   : > { %1040 = vmatpush.msra.mxu3 %v1015_v54 }
 0x282   : > { %v895_v57 = vmax.f32 %v874_v16, 0.0 }
 0x289   : > { %v876_v31 = vpop.f32.mrf.mxu1 }
 0x28a   : > { %v877_v10 = vadd.f32 %v1213_v22, %v876_v31  ;;  %v999_v31 = vld [vmem:[%s1907_s7 + $0x18] sm:$0xff] }
 0x28c   : > { %v896_v39 = vmax.f32 %v877_v10, 0.0 }
 0x2a3   : > { %v888_v51 = vpop.f32.mrf.mxu3 }
 0x2a4   : > { %v879_v8 = vpop.f32.mrf.mxu1  ;;  %v889_v21 = vadd.f32 %v1213_v22, %v888_v51  ;;  %v1214_v51 = vld [vmem:[%s1909_s9 + $0x3] ss:$0 sm:$0xff] }
 0x2a5   : > { %v880_v49 = vadd.f32 %v1213_v22, %v879_v8  ;;  %v1014_v8 = vld [vmem:[%s1908_s8 + $0x10] sm:$0xff] }
 0x2a6   : > { %v900_v45 = vmax.f32 %v889_v21, 0.0  ;;  %1041 = vmatpush.msra.mxu3 %v1014_v8 }
 0x2a7   : > { %v897_v56 = vmax.f32 %v880_v49, 0.0 }
 0x2ad   : > { %v882_v38 = vpop.f32.mrf.mxu1 }
 0x2ae   : > { %v883_v35 = vadd.f32 %v1213_v22, %v882_v38  ;;  %v1013_v38 = vld [vmem:[%s1908_s8 + $0x8] sm:$0xff] }
 0x2af   : > { %v891_v59 = vpop.f32.mrf.mxu3  ;;  %1042 = vmatpush.msra.mxu3 %v1013_v38 }
 0x2b0   : > { %v892_v18 = vadd.f32 %v1213_v22, %v891_v59  ;;  %v898_v27 = vmax.f32 %v883_v35, 0.0  ;;  %v996_v59 = vld [vmem:[%s1907_s7] sm:$0xff] }
 0x2b1   : > { %v1217_v35 = vld [vmem:[%s1909_s9 + $0x5] ss:$0 sm:$0xff] }
 0x2b2   : > { %v901_v44 = vmax.f32 %v892_v18, 0.0 }
 0x2b4   : > { %921 = vmatpush.msra.mxu2 %v901_v44  ;;  %v1216_v44 = vld [vmem:[%s1909_s9 + $0x4] ss:$0 sm:$0xff] }
 0x2b5   : > { %v885_v48 = vpop.f32.mrf.mxu1 }
 0x2b6   : > { %v886_v50 = vadd.f32 %v1213_v22, %v885_v48  ;;  %922 = vmatpush.msra.mxu2 %v900_v45  ;;  %v1012_v22 = vld [vmem:[%s1908_s8] sm:$0xff] }
 0x2b7   : > { %1043 = vmatpush.msra.mxu3 %v1012_v22 }
 0x2b8   : > { %v899_v52 = vmax.f32 %v886_v50, 0.0 }
 0x2ba   : > { %923 = vmatpush.msra.mxu2 %v899_v52  ;;  %v1218_v52 = vld [vmem:[%s1909_s9 + $0x6] ss:$0 sm:$0xff] }
 0x2bc   : > { %924 = vmatpush.msra.mxu2 %v898_v27 }
 0x2be   : > { %925 = vmatpush.msra.mxu2 %v897_v56 }
 0x2c0   : > { %926 = vmatpush.msra.mxu2 %v896_v39 }
 0x2c2   : > { %927 = vmatpush.msra.mxu2 %v895_v57 }
 0x2c4   : > { %928 = vmatpush.msra.mxu2 %v894_v12 }
 0x2c5   : > { %1173 = vmatmul.msk.f32.vlgmr.msra.gmra.mxu2 %vm805_vm7, %v909_v61 }
 0x2c6   : > { %989 = vmatpush.msrb.mxu2 %v968_v62 }
 0x2c8   : > { %990 = vmatpush.msrb.mxu2 %v967_v0 }
 0x2ca   : > { %1048 = vmatpush.msra.mxu2 %v1011_v46 }
 0x2cc   : > { %1049 = vmatpush.msra.mxu2 %v1010_v3 }
 0x2cd   : > { %1175 = vmatmul.msk.f32.vlgmr.msrb.gmra.mxu2 %vm971_vm12, %v966_v55 }
 0x2ce   : > { %1050 = vmatpush.msra.mxu2 %v1009_v40 }
 0x2d0   : > { %1051 = vmatpush.msra.mxu2 %v1008_v5 }
 0x2d2   : > { %1052 = vmatpush.msra.mxu2 %v1007_v58 }
 0x2d4   : > { %1053 = vmatpush.msra.mxu2 %v1006_v32 }
 0x2d6   : > { %1054 = vmatpush.msra.mxu2 %v1005_v9 }
 0x2d8   : > { %1055 = vmatpush.msra.mxu2 %v1004_v14 }
 0x2da   : > { %1056 = vmatpush.msra.mxu2 %v1003_v23 }
 0x2dc   : > { %1057 = vmatpush.msra.mxu2 %v1002_v1 }
 0x2de   : > { %1058 = vmatpush.msra.mxu2 %v1001_v17 }
 0x2e0   : > { %1059 = vmatpush.msra.mxu2 %v1000_v42 }
 0x2e2   : > { %1060 = vmatpush.msra.mxu2 %v999_v31 }
 0x2e4   : > { %1061 = vmatpush.msra.mxu2 %v998_v34 }
 0x2e6   : > { %1062 = vmatpush.msra.mxu2 %v997_v41 }
 0x2e8   : > { %1063 = vmatpush.msra.mxu2 %v996_v59 }
 0x348   : > { %v930_v33 = vpop.f32.mrf.mxu2 }
 0x349   : > { %1174 = vmatmul.msk.f32.vlgmr.msrb.gmra.mxu3 %vm805_vm7, %v930_v33 }
 0x350   : > { %v992_v60 = vpop.f32.mrf.mxu2 }
 0x351   : > { %v993_v36 = vadd.f32 %v1214_v51, %v992_v60 }
 0x353   : > { %v995_v37 = vmax.f32 %v993_v36, 0.0 }
 0x355   : > { %1044 = vmatmul.f32.vlgmr.msra.gmra.mxu3 %v995_v37 }
 0x3cc   : > { %v963_v21 = vpop.f32.mrf.mxu3 }
 0x3cd   : > { %v964_v18 = vadd.f32 %v1215_v63, %v963_v21 }
 0x3cf   : > { %1064 = vmatmul.f32.vlgmr.msra.gmra.mxu2 %v964_v18 }
 0x3d8   : > { %v1045_v43 = vpop.f32.mrf.mxu3 }
 0x452   : > { %v1065_v45 = vpop.f32.mrf.mxu2 }
 0x453   : > { %v1066_v19 = vadd.f32 %v1065_v45, %v1045_v43 }
 0x455   : > { %v1070_v48 = vadd.f32 %v1216_v44, %v1066_v19 }
 0x457   : > { %v1071_v50 = vmax.f32 %v1070_v48, 0.0 }
 0x459   : > { %v1074_v49 = vmul.f32 %v1217_v35, %v1071_v50 }
 0x45b   : > { %1075 = vadd.xlane.f32.xlu2 %v1074_v49 }
 0x4ce   : > { %v1076_v53 = vpop.xlane.xlu2 %1075 }
 0x4cf   : > { %v1079_v26 = vadd.f32 %v1218_v52, %v1076_v53 }
 0x4d1   : > { %1081 = vst.msk [vmem:[%s376_s22] sm:$0xff] %vm1080_vm13, %v1079_v26 }
 0x4d2 PF: > { %s20_s13 = sadd.s32 1, %s1225_s13  }
 0x4d3   : > { %p17_p5 = scmp.ge.s32.totalorder %s20_s13, 4  }
 0x4d5   :  { %19 = sbr.rel (!%p17_p5) target bundleno = 1 (0x1), region = 93 }

</bundles_post_ra>
